<compile_context>
chip_gen: v5e
topology: v5e:2x2
jax: 0.10.0
libtpu: 0.0.40
codegen_flags: <defaults>
</compile_context>

<pallas_src>
import jax
import jax.numpy as jnp
from jax.experimental import pallas as pl
from jax.experimental.pallas import tpu as pltpu


# Below this total size the pallas_call fixed overhead dwarfs the copy and
# XLA can usually fuse the transpose into the consumer -> use plain JAX.
_MIN_PALLAS_BYTES = 256 * 1024
_LANE = 128


def _transpose_kernel(x_ref, o_ref):
    # x_ref: (tS, tH) tile of one batch element; o_ref: (tH, tS).
    # Clean 2-D XLU transpose (batch dim is squeezed out by the BlockSpecs).
    o_ref[...] = x_ref[...].T


def _pick_tile(dim):
    # dim is guaranteed to be a multiple of 128 when this is called.
    for t in (512, 256, 128):
        if dim % t == 0:
            return t
    return dim


def _pallas_transpose_bsh(x):
    """Transpose (B, S, H) -> (B, H, S) with a tiled Pallas kernel."""
    B, S, H = x.shape
    tS = _pick_tile(S)   # multiple of 128 -> lane-dense on the output side
    tH = _pick_tile(H)   # multiple of 128 -> lane-dense on the input side
    itemsize = jnp.dtype(x.dtype).itemsize
    grid = (B, S // tS, H // tH)
    return pl.pallas_call(
        _transpose_kernel,
        out_shape=jax.ShapeDtypeStruct((B, H, S), x.dtype),
        grid_spec=pltpu.PrefetchScalarGridSpec(
            num_scalar_prefetch=0,
            grid=grid,
            in_specs=[
                pl.BlockSpec((pl.Squeezed(), tS, tH),
                             lambda b, i, j: (b, i, j)),
            ],
            out_specs=pl.BlockSpec((pl.Squeezed(), tH, tS),
                                   lambda b, i, j: (b, j, i)),
        ),
        compiler_params=pltpu.CompilerParams(
            # All axes independent -> let megacore (v7x 2 TCs) shard any of them.
            dimension_semantics=("parallel", "parallel", "parallel"),
            # Max tile (512x512 f32) double-buffered in+out is ~4 MiB; this is
            # a safe ceiling on every generation incl. v7x (64 MiB physical).
            vmem_limit_bytes=32 * 1024 * 1024,
        ),
        cost_estimate=pl.CostEstimate(
            flops=0,
            transcendentals=0,
            bytes_accessed=2 * B * S * H * itemsize,  # pure memory op
        ),
    )(x)


class Transpose:
    """JAX/Pallas equivalent of the PyTorch Transpose(dim_1, dim_2) module."""

    def __init__(self, dim_1, dim_2):
        self.dim_1 = dim_1
        self.dim_2 = dim_2

    def __call__(self, x):
        d1 = self.dim_1 % x.ndim
        d2 = self.dim_2 % x.ndim
        if d1 == d2:
            return x
        if x.ndim == 3 and {d1, d2} == {1, 2}:
            B, S, H = x.shape
            nbytes = B * S * H * jnp.dtype(x.dtype).itemsize
            if (nbytes >= _MIN_PALLAS_BYTES
                    and S % _LANE == 0 and H % _LANE == 0):
                return _pallas_transpose_bsh(x)
            # Tiny tensors or ragged S/H: let XLA handle/fuse the relayout.
            # TODO(synk): pad ragged S/H to 128-multiples instead of falling
            # back if this path ever becomes hot.
        # Generic-rank / other-axis transposes: pure layout permutation,
        # no interesting Pallas hot path.
        perm = list(range(x.ndim))
        perm[d1], perm[d2] = perm[d2], perm[d1]
        return jnp.transpose(x, perm)


if __name__ == "__main__":
    key = jax.random.PRNGKey(0)
    module = Transpose(1, 2)

    # 1) Tiny variance-adapter-sized input (small-tensor fallback path).
    x_small = jax.random.normal(key, (2, 8, 32), dtype=jnp.float32)
    out_small = jax.block_until_ready(module(x_small))
    assert out_small.shape == (2, 32, 8), out_small.shape
    assert bool(jnp.array_equal(out_small, jnp.transpose(x_small, (0, 2, 1))))

    # 2) 128-aligned input large enough to take the tiled Pallas path
    #    (tS=256, tH=128 -> grid (2, 1, 3)).
    k2, k3 = jax.random.split(key)
    x_big = jax.random.normal(k2, (2, 256, 384), dtype=jnp.float32)
    out_big = jax.block_until_ready(module(x_big))
    assert out_big.shape == (2, 384, 256), out_big.shape
    assert out_big.dtype == x_big.dtype
    assert bool(jnp.array_equal(out_big, jnp.transpose(x_big, (0, 2, 1))))

    # Also exercise the Pallas kernel directly.
    out_direct = jax.block_until_ready(_pallas_transpose_bsh(x_big))
    assert bool(jnp.array_equal(out_direct, jnp.transpose(x_big, (0, 2, 1))))

    # 3) Ragged sequence length -> plain-JAX fallback.
    x_ragged = jax.random.normal(k3, (2, 200, 384), dtype=jnp.float32)
    out_ragged = jax.block_until_ready(module(x_ragged))
    assert out_ragged.shape == (2, 384, 200), out_ragged.shape
    assert bool(jnp.array_equal(out_ragged, jnp.transpose(x_ragged, (0, 2, 1))))

    print("KERNEL_OK")
</pallas_src>

<mosaic_0001>
module attributes {stable_mosaic.version = 11 : i64} {
  func.func @_transpose_kernel(%arg0: i32, %arg1: i32, %arg2: i32, %arg3: memref<1x256x128xf32, #tpu.memory_space<vmem>>, %arg4: memref<1x128x256xf32, #tpu.memory_space<vmem>>) attributes {dimension_semantics = [#tpu.dimension_semantics<parallel>, #tpu.dimension_semantics<parallel>, #tpu.dimension_semantics<parallel>], iteration_bounds = array<i64: 2, 1, 3>, scalar_prefetch = 0 : i64, scratch_operands = 0 : i64, tpu.core_type = #tpu.core_type<tc>, window_params = [{transform_indices = @transform_0, window_bounds = array<i64: 1, 256, 128>}, {transform_indices = @transform_1, window_bounds = array<i64: 1, 128, 256>}]} {
    %c0 = arith.constant 0 : index
    %c0_0 = arith.constant 0 : index
    %c0_1 = arith.constant 0 : index
    %0 = vector.load %arg3[%c0, %c0_0, %c0_1] : memref<1x256x128xf32, #tpu.memory_space<vmem>>, vector<1x256x128xf32>
    %1 = vector.shape_cast %0 : vector<1x256x128xf32> to vector<256x128xf32>
    %2 = tpu.transpose %1, [1, 0] : vector<256x128xf32> -> vector<128x256xf32>
    %c0_2 = arith.constant 0 : index
    %c0_3 = arith.constant 0 : index
    %c0_4 = arith.constant 0 : index
    %3 = vector.load %arg4[%c0_2, %c0_3, %c0_4] : memref<1x128x256xf32, #tpu.memory_space<vmem>>, vector<1x128x256xf32>
    %4 = vector.shape_cast %3 : vector<1x128x256xf32> to vector<128x256xf32>
    %5 = vector.shape_cast %2 : vector<128x256xf32> to vector<1x128x256xf32>
    tpu.vector_store %arg4[%c0_2, %c0_3, %c0_4], %5 {strides = array<i32>} : memref<1x128x256xf32, #tpu.memory_space<vmem>>, vector<1x128x256xf32>,
    return
  }
  func.func @transform_0(%arg0: i32, %arg1: i32, %arg2: i32) -> (i32, i32, i32) {
    %c0_i32 = arith.constant 0 : i32
    return %arg0, %arg1, %arg2 : i32, i32, i32
  }
  func.func @transform_1(%arg0: i32, %arg1: i32, %arg2: i32) -> (i32, i32, i32) {
    %c0_i32 = arith.constant 0 : i32
    return %arg0, %arg2, %arg1 : i32, i32, i32
  }
}

</mosaic_0001>

<bundles_post_ra>
// kernel: tpu_custom_call.1
= control target key start
LH: loop header
LB: loop body
LE: loop exit
PB: predicated region body
PF: predicated region fallthrough
CT: control target
= control target key end

     0   :  { %6 = vsyncpa [#allocation3], 0  ;;  %s877_s0 = inlined_call_operand.hbm [shape: f32[2,256,384], index: 0, kind: input, shape index: {}]   ;;  %s878_s1 = inlined_call_operand.hbm [shape: f32[2,384,256], index: 1, kind: output, shape index: {}]  }
   0x1   :  { %8 = vsyncpa [#allocation3 + $0x1], 0 }
   0x2   :  { %9 = vsyncpa [#allocation4], 0 }
   0x3   :  { %11 = vsyncpa [#allocation4 + $0x1], 0  ;;  %s662_s6 = smov 0   ;;  %s664_s7 = smov 0  }
   0x4   :  { %s666_s8 = smov 0   ;;  %s668_s9 = smov 0  }
   0x5   :  { %s670_s10 = smov 0   ;;  %s672_s11 = smov 0  }
   0x6   :  { %s674_s12 = smov 0   ;;  %s676_s13 = smov 0  }
   0x7 LB: > { %s416_s14 = sadd.s32 4294967295, %s645_s13   ;;  %s417_s15 = sadd.s32 4294967294, %s645_s13   ;;  %s645_s13 = sphi %s676_s13, %s17_s13   ;;  %s641_s12 = sphi %s674_s12, %s892_s12   ;;  %s637_s11 = sphi %s672_s11, %s891_s11   ;;  %s633_s10 = sphi %s670_s10, %s890_s10   ;;  %s629_s9 = sphi %s668_s9, %s889_s9   ;;  %s625_s8 = sphi %s666_s8, %s888_s8   ;;  %s621_s7 = sphi %s664_s7, %s887_s7   ;;  %s617_s6 = sphi %s662_s6, %s886_s6  }
   0x8   : > { %s29_s16 = sadd.s32 1, %s637_s11  ;;  %s36_s17 = sadd.s32 1, %s641_s12 }
   0x9   : > { %p30_p0 = scmp.ge.s32.totalorder %s29_s16, 3  ;;  %s47_s18 = sadd.s32 1, %s625_s8 }
   0xa   : > { %p54_p1 = scmp.ne.s32.totalorder %s625_s8, %s621_s7  ;;  %p55_p2 = scmp.eq.s32.totalorder %s645_s13, 0 }
   0xb   : > { %s894_s16 = smov (%p30_p0, %s29_s16), 0  ;;  %s896_s17 = smov (!%p30_p0, %s36_s17), %s641_s12 }
   0xc   : > { %s43_s19 = ssub.s32 %s637_s11, %s894_s16  ;;  %p715_p3 = por %p55_p2, %p54_p1 }
   0xd   : > { %p38_p4 = scmp.ge.s32.totalorder %s896_s17, 2  ;;  %p60_p5 = scmp.ne.s32.totalorder %s621_s7, %s617_s6 }
   0xe   : > { %p61_p6 = scmp.eq.s32.totalorder %s416_s14, 0  ;;  %p88_p7 = scmp.eq.s32.totalorder %s416_s14, 5 }
   0xf   : > { %s898_s17 = smov (%p38_p4, %s896_s17), 0  ;;  %p94_p10 = scmp.eq.s32.totalorder %s417_s15, 5 }
  0x10   : > { %881 = sst [smem:[#allocation8_spill]] %s898_s17  ;;  %p723_p8 = por %p61_p6, %p60_p5 }
  0x11   : > { %p727_p9 = por %p88_p7, %p54_p1  ;;  %s40_s23 = ssub.s32 %s641_s12, %s898_s17 }
  0x12   : > { %s44_s24 = sor.u32 %s43_s19, %s40_s23  ;;  %p733_p12 = por %p94_p10, %p60_p5 }
  0x13   : > { %p45_p11 = scmp.eq.s32.totalorder %s44_s24, 0  ;;  %p446_p13 = scmp.lt.s32.totalorder %s645_s13, 6 }
  0x14   : > { %s114_s26 = sand.u32 1, %s625_s8   ;;  %s432_s29 = smul.u32 96, %s641_s12 }
  0x15   : > { %s740_s27 = scalar_select %p45_p11, %s625_s8, %s47_s18  }
  0x16   : > { %s420_s28 = sshll.u32 %s114_s26, 8  ;;  %p439_p0 = pnand %p446_p13, %p715_p3 }
  0x17   : > { %s118_s30 = scalar_lea.vmem [#allocation2], %s420_s28  ;;  %s125_s3 = sadd.s32 %s637_s11, %s432_s29 }
  0x18   : > { %s130_s2 = sshll.u32 %s118_s30, 4  ;;  %s421_s4 = sshll.u32 %s125_s3, 3  ;;  %s131_s2 = int_to_ptr.vmem [resolvable:$true] %s130_s2 }
  0x19   : > { %s127_s15 = scalar_lea.hbm %s877_s0, %s421_s4  ;;  %s115_s23 = scalar_lea.sflag [#allocation3], %s114_s26 }
  0x1a   : > { %s128_s19 = sshll.u32 %s127_s15, 4  ;;  %s647_s18 = smov 384   ;;  %s129_s19 = int_to_ptr.hbm [resolvable:$true] %s128_s19 }
  0x1b   : > { %s648_s24 = smov 128   ;;  %s649_s17 = smov 8  }
  0x1c   : > { %441 = dma.hbm_to_vmem [thread:$0]  (!%p439_p0), %s129_s19, 4096, %s131_s2, %s115_s23, %s647_s18, %s648_s24, %s649_s17  }
  0x1d   : > { %p422_p1 = scmp.ge.s32.totalorder %s645_s13, 1  ;;  %p138_p2 = scmp.lt.s32.totalorder %s645_s13, 7 }
  0x1f   : > { %p139_p4 = pnand %p422_p1, %p138_p2 }
  0x20   : > { %s752_s20 = sand.u32 (!%p139_p4), 1, %s621_s7  }
  0x21   : > { %142 = sbr.rel (%p139_p4) target bundleno = 330 (0x14a), region = 24  ;;  %s423_s28 = sshll.u32 (!%p139_p4), %s752_s20, 8 }
  0x22   : > { %s145_s29 = scalar_lea.sflag (!%p139_p4), [#allocation3], %s752_s20  ;;  %s758_s30 = scalar_lea.vmem (!%p139_p4), [#allocation2], %s423_s28 }
  0x26   : > { %608 = dma.done.wait (%p723_p8), %s145_s29, 4096  }
  0x27   : > { %610 = vsyncadd (%p723_p8), %s145_s29, 4294963200  ;;  %v187_v0 = vld [vmem:[%s758_s30 + $0x80] sm:$0xff]  ;;  %v188_v2 = vld [vmem:[%s758_s30 + $0x88] sm:$0xff]  ;;  %s798_s17 = scalar_lea.vmem [#allocation5], %s423_s28  ;;  %s433_s21 = smul.u32 96, %s633_s10 }
  0x28   : > { %v171_v1 = vld [vmem:[%s758_s30] sm:$0xff]  ;;  %235 = vxpose.xlu1.b32.start [1/16] %v187_v0, 128  ;;  %v172_v3 = vld [vmem:[%s758_s30 + $0x8] sm:$0xff]  ;;  %v189_v4 = vld [vmem:[%s758_s30 + $0x90] sm:$0xff]  ;;  %s431_s26 = sshll.u32 %s629_s9, 5  ;;  %s317_s10 = sshll.u32 %s798_s17, 4  ;;  %s318_s10 = int_to_ptr.vmem [resolvable:$true] %s317_s10 }
  0x29   : > { %203 = vxpose.xlu0.b32.start [1/16] %v171_v1, 128  ;;  %v173_v5 = vld [vmem:[%s758_s30 + $0x10] sm:$0xff]  ;;  %v190_v6 = vld [vmem:[%s758_s30 + $0x98] sm:$0xff]  ;;  %v191_v8 = vld [vmem:[%s758_s30 + $0xa0] sm:$0xff]  ;;  %s314_s2 = sadd.s32 %s433_s21, %s431_s26  ;;  %s300_s9 = scalar_lea.sflag [#allocation4], %s752_s20 }
  0x2a   : > { %v174_v7 = vld [vmem:[%s758_s30 + $0x18] sm:$0xff]  ;;  %v175_v9 = vld [vmem:[%s758_s30 + $0x20] sm:$0xff]  ;;  %v192_v10 = vld [vmem:[%s758_s30 + $0xa8] sm:$0xff]  ;;  %s428_s3 = sshll.u32 %s314_s2, 3  ;;  %s567_s28 = scalar_lea.hbm %s878_s1, 1536 }
  0x2b   : > { %v176_v11 = vld [vmem:[%s758_s30 + $0x28] sm:$0xff]  ;;  %v193_v12 = vld [vmem:[%s758_s30 + $0xb0] sm:$0xff]  ;;  %v194_v14 = vld [vmem:[%s758_s30 + $0xb8] sm:$0xff]  ;;  %s316_s14 = scalar_lea.hbm %s878_s1, %s428_s3 }
  0x2c   : > { %v177_v13 = vld [vmem:[%s758_s30 + $0x30] sm:$0xff]  ;;  %v178_v15 = vld [vmem:[%s758_s30 + $0x38] sm:$0xff]  ;;  %v195_v16 = vld [vmem:[%s758_s30 + $0xc0] sm:$0xff]  ;;  %s319_s15 = sshll.u32 %s316_s14, 4  ;;  %s320_s15 = int_to_ptr.hbm [resolvable:$true] %s319_s15 }
  0x2d   : > { %v179_v17 = vld [vmem:[%s758_s30 + $0x40] sm:$0xff]  ;;  %v196_v18 = vld [vmem:[%s758_s30 + $0xc8] sm:$0xff]  ;;  %v197_v20 = vld [vmem:[%s758_s30 + $0xd0] sm:$0xff]  ;;  %s561_s19 = sshra.s32 %s320_s15, 4  ;;  %s562_s19 = int_to_ptr.hbm [resolvable:$true] %s561_s19 }
  0x2e   : > { %v180_v19 = vld [vmem:[%s758_s30 + $0x48] sm:$0xff]  ;;  %v181_v21 = vld [vmem:[%s758_s30 + $0x50] sm:$0xff]  ;;  %v198_v22 = vld [vmem:[%s758_s30 + $0xd8] sm:$0xff]  ;;  %s563_s23 = scalar_lea.hbm %s562_s19, 256  ;;  %p568_p7 = scmp.lt.s32.totalorder %s562_s19, %s878_s1 }
  0x2f   : > { %v182_v23 = vld [vmem:[%s758_s30 + $0x58] sm:$0xff]  ;;  %v199_v24 = vld [vmem:[%s758_s30 + $0xe0] sm:$0xff]  ;;  %v200_v26 = vld [vmem:[%s758_s30 + $0xe8] sm:$0xff]  ;;  %p564_p3 = scmp.ne.s32.totalorder %s562_s19, %s563_s23  ;;  %p569_p8 = scmp.lt.s32.totalorder %s567_s28, %s563_s23 }
  0x30   : > { %236 = vxpose.xlu1.b32.cont [2/16] %v188_v2, 128  ;;  %v183_v25 = vld [vmem:[%s758_s30 + $0x60] sm:$0xff]  ;;  %v184_v27 = vld [vmem:[%s758_s30 + $0x68] sm:$0xff]  ;;  %v201_v28 = vld [vmem:[%s758_s30 + $0xf0] sm:$0xff] }
  0x31   : > { %204 = vxpose.xlu0.b32.cont [2/16] %v172_v3, 128  ;;  %v185_v29 = vld [vmem:[%s758_s30 + $0x70] sm:$0xff]  ;;  %v202_v30 = vld [vmem:[%s758_s30 + $0xf8] sm:$0xff]  ;;  %p565_p5 = pnand %p564_p3, %p727_p9  ;;  %p570_p10 = por %p569_p8, %p568_p7 }
  0x32   : > { %v186_v31 = vld [vmem:[%s758_s30 + $0x78] sm:$0xff] }
  0x33   : > { %p566_p6 = pneg %p565_p5 }
  0x35   : > { %p571_p11 = pnand %p570_p10, %p566_p6 }
  0x38   : > { %237 = vxpose.xlu1.b32.cont [3/16] %v189_v4, 128 }
  0x39   : > { %205 = vxpose.xlu0.b32.cont [3/16] %v173_v5, 128 }
  0x40   : > { %238 = vxpose.xlu1.b32.cont [4/16] %v190_v6, 128 }
  0x41   : > { %206 = vxpose.xlu0.b32.cont [4/16] %v174_v7, 128 }
  0x48   : > { %239 = vxpose.xlu1.b32.cont [5/16] %v191_v8, 128 }
  0x49   : > { %207 = vxpose.xlu0.b32.cont [5/16] %v175_v9, 128 }
  0x50   : > { %240 = vxpose.xlu1.b32.cont [6/16] %v192_v10, 128 }
  0x51   : > { %208 = vxpose.xlu0.b32.cont [6/16] %v176_v11, 128 }
  0x58   : > { %241 = vxpose.xlu1.b32.cont [7/16] %v193_v12, 128 }
  0x59   : > { %209 = vxpose.xlu0.b32.cont [7/16] %v177_v13, 128 }
  0x60   : > { %242 = vxpose.xlu1.b32.cont [8/16] %v194_v14, 128 }
  0x61   : > { %210 = vxpose.xlu0.b32.cont [8/16] %v178_v15, 128 }
  0x68   : > { %243 = vxpose.xlu1.b32.cont [9/16] %v195_v16, 128 }
  0x69   : > { %211 = vxpose.xlu0.b32.cont [9/16] %v179_v17, 128 }
  0x70   : > { %244 = vxpose.xlu1.b32.cont [10/16] %v196_v18, 128 }
  0x71   : > { %212 = vxpose.xlu0.b32.cont [10/16] %v180_v19, 128 }
  0x78   : > { %245 = vxpose.xlu1.b32.cont [11/16] %v197_v20, 128 }
  0x79   : > { %213 = vxpose.xlu0.b32.cont [11/16] %v181_v21, 128 }
  0x80   : > { %246 = vxpose.xlu1.b32.cont [12/16] %v198_v22, 128 }
  0x81   : > { %214 = vxpose.xlu0.b32.cont [12/16] %v182_v23, 128 }
  0x88   : > { %247 = vxpose.xlu1.b32.cont [13/16] %v199_v24, 128 }
  0x89   : > { %215 = vxpose.xlu0.b32.cont [13/16] %v183_v25, 128 }
  0x90   : > { %248 = vxpose.xlu1.b32.cont [14/16] %v200_v26, 128 }
  0x91   : > { %216 = vxpose.xlu0.b32.cont [14/16] %v184_v27, 128 }
  0x98   : > { %249 = vxpose.xlu1.b32.cont [15/16] %v201_v28, 128 }
  0x99   : > { %217 = vxpose.xlu0.b32.cont [15/16] %v185_v29, 128 }
  0xa0   : > { %250 = vxpose.xlu1.b32.end [16/16] %v202_v30, 128 }
  0xa1   : > { %218 = vxpose.xlu0.b32.end [16/16] %v186_v31, 128 }
  0xcc   : > { %v251_v32 = vpop.trf.xlu1 }
  0xcd   : > { %v219_v33 = vpop.trf.xlu0  ;;  %268 = vst [vmem:[%s798_s17 + $0x8] sm:$0xff] %v251_v32 }
  0xce   : > { %267 = vst [vmem:[%s798_s17] sm:$0xff] %v219_v33 }
  0xd4   : > { %v252_v34 = vpop.trf.xlu1 }
  0xd5   : > { %v220_v35 = vpop.trf.xlu0  ;;  %270 = vst [vmem:[%s798_s17 + $0x18] sm:$0xff] %v252_v34 }
  0xd6   : > { %269 = vst [vmem:[%s798_s17 + $0x10] sm:$0xff] %v220_v35 }
  0xdc   : > { %v253_v36 = vpop.trf.xlu1 }
  0xdd   : > { %v221_v37 = vpop.trf.xlu0  ;;  %272 = vst [vmem:[%s798_s17 + $0x28] sm:$0xff] %v253_v36 }
  0xde   : > { %271 = vst [vmem:[%s798_s17 + $0x20] sm:$0xff] %v221_v37 }
  0xe4   : > { %v254_v38 = vpop.trf.xlu1 }
  0xe5   : > { %v222_v39 = vpop.trf.xlu0  ;;  %274 = vst [vmem:[%s798_s17 + $0x38] sm:$0xff] %v254_v38 }
  0xe6   : > { %273 = vst [vmem:[%s798_s17 + $0x30] sm:$0xff] %v222_v39 }
  0xec   : > { %v255_v40 = vpop.trf.xlu1 }
  0xed   : > { %v223_v41 = vpop.trf.xlu0  ;;  %276 = vst [vmem:[%s798_s17 + $0x48] sm:$0xff] %v255_v40 }
  0xee   : > { %275 = vst [vmem:[%s798_s17 + $0x40] sm:$0xff] %v223_v41 }
  0xf4   : > { %v256_v42 = vpop.trf.xlu1 }
  0xf5   : > { %v224_v43 = vpop.trf.xlu0  ;;  %278 = vst [vmem:[%s798_s17 + $0x58] sm:$0xff] %v256_v42 }
  0xf6   : > { %277 = vst [vmem:[%s798_s17 + $0x50] sm:$0xff] %v224_v43 }
  0xfc   : > { %v257_v44 = vpop.trf.xlu1 }
  0xfd   : > { %v225_v45 = vpop.trf.xlu0  ;;  %280 = vst [vmem:[%s798_s17 + $0x68] sm:$0xff] %v257_v44 }
  0xfe   : > { %279 = vst [vmem:[%s798_s17 + $0x60] sm:$0xff] %v225_v45 }
 0x104   : > { %v258_v46 = vpop.trf.xlu1 }
 0x105   : > { %v226_v47 = vpop.trf.xlu0  ;;  %282 = vst [vmem:[%s798_s17 + $0x78] sm:$0xff] %v258_v46 }
 0x106   : > { %281 = vst [vmem:[%s798_s17 + $0x70] sm:$0xff] %v226_v47 }
 0x10c   : > { %v259_v48 = vpop.trf.xlu1 }
 0x10d   : > { %v227_v49 = vpop.trf.xlu0  ;;  %284 = vst [vmem:[%s798_s17 + $0x88] sm:$0xff] %v259_v48 }
 0x10e   : > { %283 = vst [vmem:[%s798_s17 + $0x80] sm:$0xff] %v227_v49 }
 0x114   : > { %v260_v50 = vpop.trf.xlu1 }
 0x115   : > { %v228_v51 = vpop.trf.xlu0  ;;  %286 = vst [vmem:[%s798_s17 + $0x98] sm:$0xff] %v260_v50 }
 0x116   : > { %285 = vst [vmem:[%s798_s17 + $0x90] sm:$0xff] %v228_v51 }
 0x11c   : > { %v261_v52 = vpop.trf.xlu1 }
 0x11d   : > { %v229_v53 = vpop.trf.xlu0  ;;  %288 = vst [vmem:[%s798_s17 + $0xa8] sm:$0xff] %v261_v52 }
 0x11e   : > { %287 = vst [vmem:[%s798_s17 + $0xa0] sm:$0xff] %v229_v53 }
 0x124   : > { %v262_v54 = vpop.trf.xlu1 }
 0x125   : > { %v230_v55 = vpop.trf.xlu0  ;;  %290 = vst [vmem:[%s798_s17 + $0xb8] sm:$0xff] %v262_v54 }
 0x126   : > { %289 = vst [vmem:[%s798_s17 + $0xb0] sm:$0xff] %v230_v55 }
 0x12c   : > { %v263_v56 = vpop.trf.xlu1 }
 0x12d   : > { %v231_v57 = vpop.trf.xlu0  ;;  %292 = vst [vmem:[%s798_s17 + $0xc8] sm:$0xff] %v263_v56 }
 0x12e   : > { %291 = vst [vmem:[%s798_s17 + $0xc0] sm:$0xff] %v231_v57 }
 0x134   : > { %v264_v58 = vpop.trf.xlu1 }
 0x135   : > { %v232_v59 = vpop.trf.xlu0  ;;  %294 = vst [vmem:[%s798_s17 + $0xd8] sm:$0xff] %v264_v58 }
 0x136   : > { %293 = vst [vmem:[%s798_s17 + $0xd0] sm:$0xff] %v232_v59 }
 0x13c   : > { %v265_v60 = vpop.trf.xlu1 }
 0x13d   : > { %v233_v61 = vpop.trf.xlu0  ;;  %296 = vst [vmem:[%s798_s17 + $0xe8] sm:$0xff] %v265_v60 }
 0x13e   : > { %295 = vst [vmem:[%s798_s17 + $0xe0] sm:$0xff] %v233_v61 }
 0x144   : > { %v266_v62 = vpop.trf.xlu1 }
 0x145   : > { %v234_v63 = vpop.trf.xlu0  ;;  %298 = vst [vmem:[%s798_s17 + $0xf8] sm:$0xff] %v266_v62 }
 0x146   : > { %297 = vst [vmem:[%s798_s17 + $0xf0] sm:$0xff] %v234_v63 }
 0x147   : > { %574 = shalt.err (!%p571_p11)
}
 0x148   : > { %s650_s20 = smov 256   ;;  %s651_s17 = smov 16  }
 0x149   : > { %436 = dma.vmem_to_hbm [thread:$0]  (%p727_p9), %s318_s10, 4096, %s320_s15, %s300_s9, %s650_s20, %s650_s20, %s651_s17  }
 0x14a PF: > { %p447_p13 = scmp.ge.s32.totalorder %s645_s13, 2  ;;  %s334_s21 = sand.u32 1, %s617_s6  }
 0x14b   : > { %s335_s26 = scalar_lea.sflag [#allocation4], %s334_s21 }
 0x14c   : > { %p443_p0 = pnand %p447_p13, %p733_p12 }
 0x14e   : > { %p444_p1 = pneg %p443_p0 }
 0x150   : > { %612 = dma.done.wait (%p444_p1), %s335_s26, 4096  }
 0x151   : > { %614 = vsyncadd (%p444_p1), %s335_s26, 4294963200  ;;  %s17_s13 = sadd.s32 1, %s645_s13   ;;  %s885_s22 = sld [smem:[#allocation8_spill]] }
 0x152   : > { %p14_p2 = scmp.ge.s32.totalorder %s17_s13, 8   ;;  %s886_s6 = smov %s621_s7 }
 0x153   : > { %s887_s7 = smov %s625_s8  ;;  %s888_s8 = smov %s740_s27 }
 0x154   : > { %s889_s9 = smov %s637_s11  ;;  %s890_s10 = smov %s641_s12 }
 0x155   : > { %s891_s11 = smov %s894_s16  ;;  %16 = sbr.rel (!%p14_p2) target bundleno = 7 (0x7), region = 69 }
 0x157   : > { %s892_s12 = smov %s885_s22 }
 0x15a   :  { %341 = vsyncpa [#allocation3], 1 }
 0x15b   :  { %343 = vsyncpa [#allocation3 + $0x1], 1 }
 0x15c   :  { %344 = vsyncpa [#allocation4], 1 }
 0x15d   :  { %346 = vsyncpa [#allocation4 + $0x1], 1 }

</bundles_post_ra>
